<compile_context>
chip_gen: v7x
topology: tpu7x:2x2x1
jax: 0.10.0
libtpu: 0.0.40
codegen_flags: <defaults>
</compile_context>

<pallas_src>
import functools

import jax
import jax.numpy as jnp
from jax.experimental import pallas as pl
from jax.experimental.pallas import tpu as pltpu


def _round_up(a: int, b: int) -> int:
    return ((a + b - 1) // b) * b


def _cdiv(a: int, b: int) -> int:
    return -(-a // b)


@functools.lru_cache(maxsize=1)
def _vmem_budget_bytes() -> int:
    """Per-generation VMEM budget: ~80% of physical capacity.

    v7x (64 MiB/TC) -> ~51 MiB; v5e/v6e (128 MiB) -> ~102 MiB.  The 20% slack
    leaves room for Mosaic internal scratch and the f32 intermediates.
    """
    cap = 64 * 2 ** 20  # safe default (fits every generation)
    try:
        cap = int(getattr(pltpu.get_tpu_info(), "vmem_capacity_bytes", cap))
    except Exception:
        pass
    return max(int(cap * 0.8), 32 * 2 ** 20)


# ---------------------------------------------------------------------------
# Kernels
# ---------------------------------------------------------------------------

def _fused_res_kernel(x_ref, w1_ref, b1_ref, w2_ref, b2_ref, o_ref):
    """One (bm, Dp) row tile: relu(relu(x @ W1 + b1) @ W2 + b2) + x.

    Weights are resident in VMEM (full Dp x Dp, constant index_map).  Matmuls
    run in the weight dtype on the MXU with f32 accumulation; bias/ReLU/
    residual stay in f32; single cast to the output dtype at the end.
    """
    x = x_ref[...]
    h = jnp.dot(x.astype(w1_ref.dtype), w1_ref[...],
                preferred_element_type=jnp.float32) + b1_ref[...]
    h = jnp.maximum(h, 0.0)
    y = jnp.dot(h.astype(w2_ref.dtype), w2_ref[...],
                preferred_element_type=jnp.float32) + b2_ref[...]
    y = jnp.maximum(y, 0.0)
    o_ref[...] = (y + x.astype(jnp.float32)).astype(o_ref.dtype)


def _make_linear_relu_kernel(add_residual: bool):
    """K/N-tiled linear (+bias, ReLU, optional residual) with f32 accumulator.

    Grid = (row tiles, N tiles, K tiles); reduction axis (K) last, "arbitrary".
    """
    def kernel(x_ref, w_ref, b_ref, *rest):
        if add_residual:
            r_ref, o_ref, acc_ref = rest
        else:
            o_ref, acc_ref = rest

        k = pl.program_id(2)

        @pl.when(k == 0)
        def _():
            acc_ref[...] = jnp.zeros_like(acc_ref)

        acc_ref[...] += jnp.dot(x_ref[...].astype(w_ref.dtype), w_ref[...],
                                preferred_element_type=jnp.float32)

        @pl.when(k == pl.num_programs(2) - 1)
        def _():
            y = jnp.maximum(acc_ref[...] + b_ref[...], 0.0)
            if add_residual:
                y = y + r_ref[...].astype(jnp.float32)
            o_ref[...] = y.astype(o_ref.dtype)

    return kernel


# ---------------------------------------------------------------------------
# pallas_call wrappers
# ---------------------------------------------------------------------------

def _fused_path(x, w1, b1, w2, b2, bm, grid_m, vmem_limit):
    M, Dp = x.shape
    x_isz = jnp.dtype(x.dtype).itemsize
    w_isz = jnp.dtype(w1.dtype).itemsize
    weight_bytes = 2 * Dp * Dp * w_isz + 2 * Dp * 4

    cost = pl.CostEstimate(
        flops=2 * 2 * M * Dp * Dp,                       # two dense matmuls
        transcendentals=0,
        bytes_accessed=2 * M * Dp * x_isz + weight_bytes,  # x read + out write + weights
    )

    return pl.pallas_call(
        _fused_res_kernel,
        out_shape=jax.ShapeDtypeStruct((M, Dp), x.dtype),
        grid_spec=pltpu.PrefetchScalarGridSpec(
            num_scalar_prefetch=0,
            grid=(grid_m,),
            in_specs=[
                pl.BlockSpec((bm, Dp), lambda i: (i, 0)),   # streamed x row tile
                pl.BlockSpec((Dp, Dp), lambda i: (0, 0)),   # W1 (resident)
                pl.BlockSpec((1, Dp), lambda i: (0, 0)),    # b1
                pl.BlockSpec((Dp, Dp), lambda i: (0, 0)),   # W2 (resident)
                pl.BlockSpec((1, Dp), lambda i: (0, 0)),    # b2
            ],
            out_specs=pl.BlockSpec((bm, Dp), lambda i: (i, 0)),  # lane-dense out
        ),
        compiler_params=pltpu.CompilerParams(
            dimension_semantics=("parallel",),      # megacore-shardable on v7x
            vmem_limit_bytes=int(vmem_limit),
        ),
        cost_estimate=cost,
    )(x, w1, b1, w2, b2)


def _pick_dp_tile(dp: int, pref: int = 512) -> int:
    t = min(dp, pref)
    t = (t // 128) * 128
    while dp % t != 0:
        t -= 128
    return t


def _tiled_linear(x, w, b, residual, *, out_dtype, bm, vmem_limit):
    M, K = x.shape
    N = w.shape[1]
    bk = _pick_dp_tile(K)
    bn = _pick_dp_tile(N)
    grid = (_cdiv(M, bm), N // bn, K // bk)

    add_res = residual is not None
    kernel = _make_linear_relu_kernel(add_res)

    in_specs = [
        pl.BlockSpec((bm, bk), lambda i, j, k: (i, k)),
        pl.BlockSpec((bk, bn), lambda i, j, k: (k, j)),
        pl.BlockSpec((1, bn), lambda i, j, k: (0, j)),
    ]
    args = [x, w, b]
    if add_res:
        in_specs.append(pl.BlockSpec((bm, bn), lambda i, j, k: (i, j)))
        args.append(residual)

    cost = pl.CostEstimate(
        flops=2 * M * K * N,
        transcendentals=0,
        bytes_accessed=(M * K * jnp.dtype(x.dtype).itemsize
                        + K * N * jnp.dtype(w.dtype).itemsize
                        + M * N * jnp.dtype(out_dtype).itemsize),
    )

    return pl.pallas_call(
        kernel,
        out_shape=jax.ShapeDtypeStruct((M, N), out_dtype),
        grid_spec=pltpu.PrefetchScalarGridSpec(
            num_scalar_prefetch=0,
            grid=grid,
            in_specs=in_specs,
            out_specs=pl.BlockSpec((bm, bn), lambda i, j, k: (i, j)),
            scratch_shapes=[pltpu.VMEM((bm, bn), jnp.float32)],
        ),
        compiler_params=pltpu.CompilerParams(
            dimension_semantics=("parallel", "parallel", "arbitrary"),
            vmem_limit_bytes=int(vmem_limit),
        ),
        cost_estimate=cost,
    )(*args)


def _tiled_path(x, w1, b1, w2, b2, bm, vmem_limit):
    # Large-D fallback: two chained K/N-tiled matmul kernels.
    # h goes through HBM in the weight (compute) dtype.
    h = _tiled_linear(x, w1, b1, None, out_dtype=w1.dtype, bm=bm,
                      vmem_limit=vmem_limit)
    return _tiled_linear(h, w2, b2, x, out_dtype=x.dtype, bm=bm,
                         vmem_limit=vmem_limit)


# ---------------------------------------------------------------------------
# Public API
# ---------------------------------------------------------------------------

@functools.partial(jax.jit, static_argnames=("bm", "force_tiled"))
def _res_layer_fwd(x, w1, b1, w2, b2, *, bm, force_tiled):
    M, D = x.shape
    Dp = w1.shape[0]
    if w1.shape != (Dp, Dp) or w2.shape != (Dp, Dp) or D > Dp:
        raise ValueError("params do not match input feature dim; "
                         "build them with prepare_res_layer_params().")

    # Only the feature axis of x is padded (to keep stores lane-dense); the
    # padded weight columns/bias lanes are zero so padded output lanes stay 0.
    x_p = jnp.pad(x, ((0, 0), (0, Dp - D))) if Dp != D else x

    itemsize = jnp.dtype(x.dtype).itemsize
    granule = {4: 8, 2: 16, 1: 32}.get(itemsize, 8)   # sublane packing granule

    # Row tile: large, but capped so the grid has >= 2 steps (v7x megacore) and
    # rounded to the sublane granule so the (8, 128) tiling constraint holds.
    bm_eff = max(granule, min(_round_up(bm, granule), _round_up(M, granule)))
    if _cdiv(M, bm_eff) < 2 and M > granule:
        bm_eff = _round_up(_cdiv(M, 2), granule)
    grid_m = _cdiv(M, bm_eff)   # ragged tail block handled by Pallas masking

    # VMEM accounting for the fused (full-weight-resident) path.
    w_itemsize = jnp.dtype(w1.dtype).itemsize
    weight_bytes = 2 * Dp * Dp * w_itemsize + 2 * Dp * 4
    tile_bytes = bm_eff * Dp * itemsize
    fused_vmem = (2 * tile_bytes           # x tile, double-buffered
                  + 2 * tile_bytes         # out tile, double-buffered
                  + 2 * weight_bytes       # resident weights (default 2 bufs)
                  + 2 * bm_eff * Dp * 4)   # f32 intermediates headroom
    budget = _vmem_budget_bytes()

    if force_tiled or fused_vmem > budget:
        out_p = _tiled_path(x_p, w1, b1, w2, b2, bm_eff, budget)
    else:
        out_p = _fused_path(x_p, w1, b1, w2, b2, bm_eff, grid_m, budget)

    return out_p[:, :D] if Dp != D else out_p


def prepare_res_layer_params(w1, b1, w2, b2, *, compute_dtype=jnp.float32):
    """One-time parameter prep (hoisted off the hot path).

    Takes PyTorch nn.Linear layout: w1 [out_dim, in_dim], w2 [out_dim, out_dim],
    b1/b2 [out_dim].  Pre-transposes to [in, out] (kernel computes x @ W on the
    MXU) and zero-pads the feature dim to 128 (D <= 128) or a multiple of 256.
    compute_dtype=jnp.bfloat16 enables the ~3x-faster bf16 MXU path (slightly
    looser numerics vs the f32 PyTorch reference).
    """
    out_dim, in_dim = w1.shape
    if in_dim != out_dim:
        raise ValueError(f"ResLayer residual requires in_dim == out_dim, "
                         f"got in_dim={in_dim}, out_dim={out_dim}")
    if w2.shape != (out_dim, out_dim):
        raise ValueError(f"w2 must be [{out_dim}, {out_dim}], got {w2.shape}")

    D = out_dim
    Dp = 128 if D <= 128 else _round_up(D, 256)  # lane-dense + 256-wide MXU
    pad = Dp - D

    w1_t = jnp.pad(jnp.asarray(w1).T, ((0, pad), (0, pad))).astype(compute_dtype)
    w2_t = jnp.pad(jnp.asarray(w2).T, ((0, pad), (0, pad))).astype(compute_dtype)
    b1_p = jnp.pad(jnp.reshape(jnp.asarray(b1), (1, D)), ((0, 0), (0, pad))).astype(jnp.float32)
    b2_p = jnp.pad(jnp.reshape(jnp.asarray(b2), (1, D)), ((0, 0), (0, pad))).astype(jnp.float32)
    return {"w1": w1_t, "b1": b1_p, "w2": w2_t, "b2": b2_p, "d": D}


def res_layer(x, params, *, bm=256, force_tiled=False):
    """Fused ResLayer forward: relu(lin2(relu(lin1(x)))) + x, x: [..., D]."""
    D = params["d"]
    if x.shape[-1] != D:
        raise ValueError(f"x feature dim {x.shape[-1]} != layer dim {D}")
    lead = x.shape[:-1]
    x2 = x if x.ndim == 2 else x.reshape((-1, D))
    out = _res_layer_fwd(x2, params["w1"], params["b1"], params["w2"],
                         params["b2"], bm=int(bm), force_tiled=bool(force_tiled))
    return out if x.ndim == 2 else out.reshape(lead + (D,))


def res_layer_ref(x, w1, b1, w2, b2):
    """Pure-JAX reference with PyTorch nn.Linear semantics (y = x @ W.T + b)."""
    h = jnp.maximum(x @ w1.T + b1, 0.0)
    y = jnp.maximum(h @ w2.T + b2, 0.0)
    return y + x


if __name__ == "__main__":
    key = jax.random.PRNGKey(0)
    M, D = 64, 32   # small demo: batch of 64 rows, in_dim = out_dim = 32

    kx, kw1, kb1, kw2, kb2 = jax.random.split(key, 5)
    bound = 1.0 / jnp.sqrt(D)  # mimic nn.Linear default init range (deterministic)
    x = jax.random.normal(kx, (M, D), dtype=jnp.float32)
    w1 = jax.random.uniform(kw1, (D, D), minval=-bound, maxval=bound, dtype=jnp.float32)
    b1 = jax.random.uniform(kb1, (D,), minval=-bound, maxval=bound, dtype=jnp.float32)
    w2 = jax.random.uniform(kw2, (D, D), minval=-bound, maxval=bound, dtype=jnp.float32)
    b2 = jax.random.uniform(kb2, (D,), minval=-bound, maxval=bound, dtype=jnp.float32)

    params = prepare_res_layer_params(w1, b1, w2, b2)   # padded once, off the hot path
    expected = res_layer_ref(x, w1, b1, w2, b2)

    # Fused (weight-resident) path.
    out = jax.block_until_ready(res_layer(x, params))
    assert out.shape == (M, D)
    assert jnp.allclose(out, expected, atol=1e-5, rtol=1e-5), "fused path mismatch"

    # Also exercise the large-D K/N-tiled fallback path at this small shape.
    out_t = jax.block_until_ready(res_layer(x, params, force_tiled=True))
    assert out_t.shape == (M, D)
    assert jnp.allclose(out_t, expected, atol=1e-5, rtol=1e-5), "tiled path mismatch"

    print("KERNEL_OK")
</pallas_src>

<mosaic_0001>
module attributes {stable_mosaic.version = 11 : i64} {
  func.func @_fused_res_kernel(%arg0: i32, %arg1: memref<32x128xf32, #tpu.memory_space<vmem>>, %arg2: memref<128x128xf32, #tpu.memory_space<vmem>>, %arg3: memref<1x128xf32, #tpu.memory_space<vmem>>, %arg4: memref<128x128xf32, #tpu.memory_space<vmem>>, %arg5: memref<1x128xf32, #tpu.memory_space<vmem>>, %arg6: memref<32x128xf32, #tpu.memory_space<vmem>>) attributes {dimension_semantics = [#tpu.dimension_semantics<parallel>], iteration_bounds = array<i64: 2>, scalar_prefetch = 0 : i64, scratch_operands = 0 : i64, tpu.core_type = #tpu.core_type<tc>, window_params = [{transform_indices = @transform_0, window_bounds = array<i64: 32, 128>}, {pipeline_mode = #tpu.pipeline_mode<synchronous>, transform_indices = @transform_1, window_bounds = array<i64: 128, 128>}, {pipeline_mode = #tpu.pipeline_mode<synchronous>, transform_indices = @transform_2, window_bounds = array<i64: 1, 128>}, {pipeline_mode = #tpu.pipeline_mode<synchronous>, transform_indices = @transform_3, window_bounds = array<i64: 128, 128>}, {pipeline_mode = #tpu.pipeline_mode<synchronous>, transform_indices = @transform_4, window_bounds = array<i64: 1, 128>}, {transform_indices = @transform_5, window_bounds = array<i64: 32, 128>}]} {
    %c0 = arith.constant 0 : index
    %c0_0 = arith.constant 0 : index
    %0 = vector.load %arg1[%c0, %c0_0] : memref<32x128xf32, #tpu.memory_space<vmem>>, vector<32x128xf32>
    %c0_1 = arith.constant 0 : index
    %c0_2 = arith.constant 0 : index
    %1 = vector.load %arg2[%c0_1, %c0_2] : memref<128x128xf32, #tpu.memory_space<vmem>>, vector<128x128xf32>
    %cst = arith.constant dense<0.000000e+00> : vector<32x128xf32>
    %2 = tpu.matmul %0, %1, %cst {dimension_numbers = #tpu.dot_dimension_numbers<[1], [0], [0], [1], [0, 0, 1, 1], [], []>} : vector<32x128xf32>, vector<128x128xf32>, vector<32x128xf32> -> vector<32x128xf32>
    %c0_3 = arith.constant 0 : index
    %c0_4 = arith.constant 0 : index
    %3 = vector.load %arg3[%c0_3, %c0_4] : memref<1x128xf32, #tpu.memory_space<vmem>>, vector<1x128xf32>
    %4 = vector.broadcast %3 : vector<1x128xf32> to vector<32x128xf32>
    %5 = arith.addf %2, %4 : vector<32x128xf32>
    %cst_5 = arith.constant 0.000000e+00 : f32
    %6 = vector.broadcast %cst_5 : f32 to vector<32x128xf32>
    %7 = arith.maximumf %5, %6 : vector<32x128xf32>
    %c0_6 = arith.constant 0 : index
    %c0_7 = arith.constant 0 : index
    %8 = vector.load %arg4[%c0_6, %c0_7] : memref<128x128xf32, #tpu.memory_space<vmem>>, vector<128x128xf32>
    %cst_8 = arith.constant dense<0.000000e+00> : vector<32x128xf32>
    %9 = tpu.matmul %7, %8, %cst_8 {dimension_numbers = #tpu.dot_dimension_numbers<[1], [0], [0], [1], [0, 0, 1, 1], [], []>} : vector<32x128xf32>, vector<128x128xf32>, vector<32x128xf32> -> vector<32x128xf32>
    %c0_9 = arith.constant 0 : index
    %c0_10 = arith.constant 0 : index
    %10 = vector.load %arg5[%c0_9, %c0_10] : memref<1x128xf32, #tpu.memory_space<vmem>>, vector<1x128xf32>
    %11 = vector.broadcast %10 : vector<1x128xf32> to vector<32x128xf32>
    %12 = arith.addf %9, %11 : vector<32x128xf32>
    %cst_11 = arith.constant 0.000000e+00 : f32
    %13 = vector.broadcast %cst_11 : f32 to vector<32x128xf32>
    %14 = arith.maximumf %12, %13 : vector<32x128xf32>
    %15 = arith.addf %14, %0 : vector<32x128xf32>
    %c0_12 = arith.constant 0 : index
    %c0_13 = arith.constant 0 : index
    %16 = vector.load %arg6[%c0_12, %c0_13] : memref<32x128xf32, #tpu.memory_space<vmem>>, vector<32x128xf32>
    tpu.vector_store %arg6[%c0_12, %c0_13], %15 {strides = array<i32>} : memref<32x128xf32, #tpu.memory_space<vmem>>, vector<32x128xf32>,
    return
  }
  func.func @transform_0(%arg0: i32) -> (i32, i32) {
    %c0_i32 = arith.constant 0 : i32
    %c0_i32_0 = arith.constant 0 : i32
    return %arg0, %c0_i32 : i32, i32
  }
  func.func @transform_1(%arg0: i32) -> (i32, i32) {
    %c0_i32 = arith.constant 0 : i32
    %c0_i32_0 = arith.constant 0 : i32
    %c0_i32_1 = arith.constant 0 : i32
    return %c0_i32, %c0_i32_0 : i32, i32
  }
  func.func @transform_2(%arg0: i32) -> (i32, i32) {
    %c0_i32 = arith.constant 0 : i32
    %c0_i32_0 = arith.constant 0 : i32
    %c0_i32_1 = arith.constant 0 : i32
    return %c0_i32, %c0_i32_0 : i32, i32
  }
  func.func @transform_3(%arg0: i32) -> (i32, i32) {
    %c0_i32 = arith.constant 0 : i32
    %c0_i32_0 = arith.constant 0 : i32
    %c0_i32_1 = arith.constant 0 : i32
    return %c0_i32, %c0_i32_0 : i32, i32
  }
  func.func @transform_4(%arg0: i32) -> (i32, i32) {
    %c0_i32 = arith.constant 0 : i32
    %c0_i32_0 = arith.constant 0 : i32
    %c0_i32_1 = arith.constant 0 : i32
    return %c0_i32, %c0_i32_0 : i32, i32
  }
  func.func @transform_5(%arg0: i32) -> (i32, i32) {
    %c0_i32 = arith.constant 0 : i32
    %c0_i32_0 = arith.constant 0 : i32
    return %arg0, %c0_i32 : i32, i32
  }
}

</mosaic_0001>

<bundles_post_ra>
// kernel: _res_layer_fwd.1
= control target key start
LH: loop header
LB: loop body
LE: loop exit
PB: predicated region body
PF: predicated region fallthrough
CT: control target
= control target key end

     0   :  { %10 = vsyncpa [#allocation3], 0  ;;  %s836_s18 = smov 0   ;;  %s966_s0 = inlined_call_operand.vmem [shape: f32[64,128], index: 0, kind: input, shape index: {}]   ;;  %s967_s1 = inlined_call_operand.vmem [shape: f32[128,128], index: 1, kind: input, shape index: {}]   ;;  %s968_s2 = inlined_call_operand.vmem [shape: f32[1,128], index: 2, kind: input, shape index: {}]   ;;  %s969_s3 = inlined_call_operand.hbm [shape: f32[128,128], index: 3, kind: input, shape index: {}]   ;;  %s970_s4 = inlined_call_operand.vmem [shape: f32[1,128], index: 4, kind: input, shape index: {}]   ;;  %s971_s5 = inlined_call_operand.vmem [shape: f32[64,128], index: 5, kind: output, shape index: {}]  }
   0x1 LB: > { %s547_s19 = sadd.s32 4294967295, %s801_s18   ;;  %p549_p0 = scmp.ge.s32.totalorder %s801_s18, 1  ;;  %s801_s18 = sphi %s836_s18, %s16_s18  }
   0x2   : > { %p157_p1 = scmp.lt.s32.totalorder %s801_s18, 3  ;;  %s803_s20 = smov [#allocation2]  }
   0x3   : > { %s175_s21 = sshll.u32 %s803_s20, 4  ;;  %p850_p3 = scmp.eq.s32.totalorder %s547_s19, 0  ;;  %s176_s21 = int_to_ptr.vmem [resolvable:$true] %s175_s21 }
   0x4   : > { %p844_p2 = pnand %p549_p0, %p157_p1  ;;  %s763_s27 = scalar_lea.hbm %s969_s3, 2048 }
   0x5   : > { %s976_s23 = scalar_select %p850_p3, 1, 0 }
   0x6   : > { %s975_s22 = scalar_select %p844_p2, 1, 0 }
   0x7   : > { %p746_p4 = pneg %p844_p2  ;;  %p764_p6 = scmp.ne.s32.totalorder %s969_s3, %s763_s27 }
   0x8   : > { %p770_p10 = scmp.lt.u32.totalorder %s763_s27, %s969_s3 }
   0x9   : > { %p858_p5 = pnand %p850_p3, %p746_p4 }
   0xb   : > { %p765_p7 = pneg %p858_p5 }
   0xd   : > { %p766_p8 = pnand %p765_p7, %p764_p6 }
   0xf   : > { %p767_p9 = pneg %p766_p8 }
  0x11   : > { %p772_p11 = pnand %p770_p10, %p767_p9 }
  0x13   : > { %775 = shalt.err (!%p772_p11)
}
  0x14   : > { %s776_s7 = scalar_lea.vmem %s176_s21, 2048  ;;  %p784_p1 = scmp.lt.s32.totalorder %s176_s21, %s176_s21 }
  0x15   : > { %p777_p12 = scmp.ne.s32.totalorder %s176_s21, %s776_s7  ;;  %p785_p4 = scmp.lt.s32.totalorder %s776_s7, %s776_s7 }
  0x17   : > { %p779_p13 = pnand %p777_p12, %p765_p7  ;;  %p786_p3 = por %p785_p4, %p784_p1 }
  0x19   : > { %p780_p0 = pneg %p779_p13 }
  0x1b   : > { %p787_p2 = pnand %p786_p3, %p780_p0 }
  0x1d   : > { %790 = shalt.err (!%p787_p2)
}
  0x1e   : > { %s804_s8 = smov 128   ;;  %s805_s9 = smov 8  }
  0x1f   : > { %749 = dma.hbm_to_vmem [thread:$0]  (!%p858_p5), %s969_s3, 2048, %s176_s21, [#allocation3], %s804_s8, %s804_s8, %s805_s9  }
  0x20   : > { %p978_p6 = scmp.ne.s32.totalorder %s975_s22, 0 }
  0x21   : > { %p979_p8 = scmp.ne.s32.totalorder (!%p978_p6), %s976_s23, 0 }
  0x22   : > { %203 = sbr.rel (%p978_p6) target bundleno = 519 (0x207), region = 40 }
  0x29   : > { %796 = dma.done.wait (%p979_p8), [#allocation3], 2048  }
  0x2a   : > { %798 = vsyncadd (%p979_p8), [#allocation3], 4294965248  ;;  %s554_s12 = sshll.u32 %s547_s19, 2  ;;  %v247_v0 = vld [vmem:[%s967_s1] sm:$0xff]  ;;  %v248_v1 = vld [vmem:[%s967_s1 + $0x8] sm:$0xff] }
  0x2b   : > { %p232_p2 = scmp.lt.s32.totalorder %s554_s12, 7  ;;  %v249_v2 = vld [vmem:[%s967_s1 + $0x10] sm:$0xff]  ;;  %v678_v3 = vpack.c.bf16 %v248_v1, %v247_v0  ;;  %v250_v4 = vld [vmem:[%s967_s1 + $0x18] sm:$0xff]  ;;  %v251_v6 = vld [vmem:[%s967_s1 + $0x20] sm:$0xff] }
  0x2c   : > { %v682_v5 = vpack.c.bf16 %v250_v4, %v249_v2  ;;  %v252_v7 = vld [vmem:[%s967_s1 + $0x28] sm:$0xff]  ;;  %v253_v10 = vld [vmem:[%s967_s1 + $0x30] sm:$0xff]  ;;  %v254_v11 = vld [vmem:[%s967_s1 + $0x38] sm:$0xff] }
  0x2d   : > { %s981_s12 = smov (!%p232_p2, %s554_s12), 7  ;;  %679 = vmatprep.subr.bf16.mxu0 %v678_v3  ;;  %v686_v8 = vpack.c.bf16 %v252_v7, %v251_v6  ;;  %v359_v12 = vld [vmem:[#allocation2] sm:$0xff]  ;;  %v360_v13 = vld [vmem:[#allocation2 + $0x8] sm:$0xff]  ;;  %v361_v14 = vld [vmem:[#allocation2 + $0x10] sm:$0xff]  ;;  %v690_v18 = vpack.c.bf16 %v254_v11, %v253_v10 }
  0x2e   : > { %s555_s13 = sshll.u32 %s981_s12, 3  ;;  %681 = vmatpush3.bf16.msra.mxu0 %v678_v3  ;;  %v362_v15 = vld [vmem:[#allocation2 + $0x18] sm:$0xff]  ;;  %v710_v16 = vpack.c.bf16 %v360_v13, %v359_v12  ;;  %v363_v19 = vld [vmem:[#allocation2 + $0x20] sm:$0xff]  ;;  %v364_v20 = vld [vmem:[#allocation2 + $0x28] sm:$0xff] }
  0x2f   : > { %s912_s29 = scalar_lea.vmem %s966_s0, %s555_s13  ;;  %683 = vmatprep.subr.bf16.mxu0 %v682_v5  ;;  %v714_v17 = vpack.c.bf16 %v362_v15, %v361_v14  ;;  %v255_v21 = vld [vmem:[%s967_s1 + $0x40] sm:$0xff]  ;;  %v256_v22 = vld [vmem:[%s967_s1 + $0x48] sm:$0xff]  ;;  %v718_v23 = vpack.c.bf16 %v364_v20, %v363_v19  ;;  %v365_v25 = vld [vmem:[#allocation2 + $0x30] sm:$0xff]  ;;  %s241_s9 = scalar_lea.vmem %s971_s5, %s555_s13 }
  0x30   : > { %v915_v9 = vld [vmem:[%s912_s29] sm:$0xff]  ;;  %711 = vmatprep.subr.bf16.mxu1 %v710_v16  ;;  %v694_v24 = vpack.c.bf16 %v256_v22, %v255_v21  ;;  %v366_v26 = vld [vmem:[#allocation2 + $0x38] sm:$0xff]  ;;  %v257_v27 = vld [vmem:[%s967_s1 + $0x50] sm:$0xff] }
  0x31   : > { %634 = vmatprep.mubr.f32.mxu0 %v915_v9  ;;  %713 = vmatpush3.bf16.msra.mxu1 %v710_v16  ;;  %v258_v28 = vld [vmem:[%s967_s1 + $0x58] sm:$0xff]  ;;  %v722_v29 = vpack.c.bf16 %v366_v26, %v365_v25  ;;  %v367_v31 = vld [vmem:[#allocation2 + $0x40] sm:$0xff]  ;;  %v368_v32 = vld [vmem:[#allocation2 + $0x48] sm:$0xff] }
  0x32   : > { %685 = vmatpush3.bf16.msra.mxu0 %v682_v5  ;;  %715 = vmatprep.subr.bf16.mxu1 %v714_v17  ;;  %v698_v30 = vpack.c.bf16 %v258_v28, %v257_v27  ;;  %v259_v33 = vld [vmem:[%s967_s1 + $0x60] sm:$0xff]  ;;  %v260_v34 = vld [vmem:[%s967_s1 + $0x68] sm:$0xff]  ;;  %v726_v35 = vpack.c.bf16 %v368_v32, %v367_v31  ;;  %v369_v37 = vld [vmem:[#allocation2 + $0x50] sm:$0xff] }
  0x33   : > { %687 = vmatprep.subr.bf16.mxu0 %v686_v8  ;;  %v702_v36 = vpack.c.bf16 %v260_v34, %v259_v33  ;;  %v370_v38 = vld [vmem:[#allocation2 + $0x58] sm:$0xff]  ;;  %v261_v39 = vld [vmem:[%s967_s1 + $0x70] sm:$0xff]  ;;  %v371_v43 = vld [vmem:[#allocation2 + $0x60] sm:$0xff] }
  0x34   : > { %v262_v40 = vld [vmem:[%s967_s1 + $0x78] sm:$0xff]  ;;  %v730_v41 = vpack.c.bf16 %v370_v38, %v369_v37  ;;  %v372_v44 = vld [vmem:[#allocation2 + $0x68] sm:$0xff]  ;;  %v245_v47 = vld [vmem:[%s912_s29 + $0x10] sm:$0xff] }
  0x35   : > { %717 = vmatpush3.bf16.msra.mxu1 %v714_v17  ;;  %v706_v42 = vpack.c.bf16 %v262_v40, %v261_v39  ;;  %v734_v45 = vpack.c.bf16 %v372_v44, %v371_v43  ;;  %v244_v46 = vld [vmem:[%s912_s29 + $0x8] sm:$0xff]  ;;  %v246_v48 = vld [vmem:[%s912_s29 + $0x18] sm:$0xff]  ;;  %v373_v49 = vld [vmem:[#allocation2 + $0x70] sm:$0xff] }
  0x36   : > { %689 = vmatpush3.bf16.msra.mxu0 %v686_v8  ;;  %719 = vmatprep.subr.bf16.mxu1 %v718_v23  ;;  %v374_v50 = vld [vmem:[#allocation2 + $0x78] sm:$0xff]  ;;  %v558_v52 = vld [vmem:[%s968_s2] ss:$0 sm:$0xff] }
  0x37   : > { %691 = vmatprep.subr.bf16.mxu0 %v690_v18  ;;  %v738_v51 = vpack.c.bf16 %v374_v50, %v373_v49  ;;  %v559_v1 = vld [vmem:[%s970_s4] ss:$0 sm:$0xff] }
  0x39   : > { %721 = vmatpush3.bf16.msra.mxu1 %v718_v23 }
  0x3a   : > { %693 = vmatpush3.bf16.msra.mxu0 %v690_v18  ;;  %723 = vmatprep.subr.bf16.mxu1 %v722_v29 }
  0x3b   : > { %695 = vmatprep.subr.bf16.mxu0 %v694_v24 }
  0x3d   : > { %725 = vmatpush3.bf16.msra.mxu1 %v722_v29 }
  0x3e   : > { %697 = vmatpush3.bf16.msra.mxu0 %v694_v24  ;;  %727 = vmatprep.subr.bf16.mxu1 %v726_v35 }
  0x3f   : > { %699 = vmatprep.subr.bf16.mxu0 %v698_v30 }
  0x41   : > { %729 = vmatpush3.bf16.msra.mxu1 %v726_v35 }
  0x42   : > { %701 = vmatpush3.bf16.msra.mxu0 %v698_v30  ;;  %731 = vmatprep.subr.bf16.mxu1 %v730_v41 }
  0x43   : > { %703 = vmatprep.subr.bf16.mxu0 %v702_v36 }
  0x45   : > { %733 = vmatpush3.bf16.msra.mxu1 %v730_v41 }
  0x46   : > { %705 = vmatpush3.bf16.msra.mxu0 %v702_v36  ;;  %735 = vmatprep.subr.bf16.mxu1 %v734_v45 }
  0x47   : > { %707 = vmatprep.subr.bf16.mxu0 %v706_v42 }
  0x49   : > { %737 = vmatpush3.bf16.msra.mxu1 %v734_v45 }
  0x4a   : > { %709 = vmatpush3.bf16.msra.mxu0 %v706_v42  ;;  %739 = vmatprep.subr.bf16.mxu1 %v738_v51 }
  0x4d   : > { %635 = vmatmul.mubr.f32.vlgmr.msra.gmra.mrb[0].mxu0 %v244_v46  ;;  %741 = vmatpush3.bf16.msra.mxu1 %v738_v51 }
  0x4e   : > { %637 = vmatprep.mubr.f32.mxu0 %v245_v47 }
  0x51   : > { %638 = vmatmul.mubr.f32.gmra.mrb[2].mxu0 %v246_v48 }
 0x120   : > { %v636_v53 = vpop.f32.mrb[0].mxu0 }
 0x121   : > { %v342_v54 = vadd.f32 %v636_v53, %v558_v52  ;;  %v336_v55 = vpop.f32.mrb[1].mxu0 }
 0x122   : > { %v337_v56 = vadd.f32 %v558_v52, %v336_v55 }
 0x123   : > { %v356_v59 = vmax.f32 %v342_v54, 0.0 }
 0x124   : > { %v639_v57 = vpop.f32.mrb[2].mxu0  ;;  %v355_v58 = vmax.f32 %v337_v56, 0.0 }
 0x125   : > { %v352_v60 = vadd.f32 %v639_v57, %v558_v52  ;;  %v346_v61 = vpop.f32.mrb[3].mxu0 }
 0x126   : > { %v347_v62 = vadd.f32 %v558_v52, %v346_v61  ;;  %672 = vmatprep.mubr.f32.mxu1 %v355_v58 }
 0x127   : > { %673 = vmatmul.mubr.f32.vlgmr.msra.gmra.mrb[0].mxu1 %v356_v59  ;;  %v358_v0 = vmax.f32 %v352_v60, 0.0 }
 0x128   : > { %v357_v63 = vmax.f32 %v347_v62, 0.0 }
 0x12a   : > { %675 = vmatprep.mubr.f32.mxu1 %v357_v63 }
 0x12b   : > { %676 = vmatmul.mubr.f32.gmra.mrb[2].mxu1 %v358_v0 }
 0x1fa   : > { %v674_v2 = vpop.f32.mrb[0].mxu1 }
 0x1fb   : > { %v454_v3 = vadd.f32 %v674_v2, %v559_v1  ;;  %v448_v4 = vpop.f32.mrb[1].mxu1 }
 0x1fc   : > { %v449_v5 = vadd.f32 %v559_v1, %v448_v4 }
 0x1fd   : > { %v468_v6 = vmax.f32 %v454_v3, 0.0 }
 0x1fe   : > { %v467_v7 = vmax.f32 %v449_v5, 0.0  ;;  %v677_v8 = vpop.f32.mrb[2].mxu1 }
 0x1ff   : > { %v464_v10 = vadd.f32 %v677_v8, %v559_v1  ;;  %v458_v11 = vpop.f32.mrb[3].mxu1  ;;  %v472_v14 = vadd.f32 %v468_v6, %v244_v46 }
 0x200   : > { %v471_v12 = vadd.f32 %v467_v7, %v915_v9  ;;  %v459_v13 = vadd.f32 %v559_v1, %v458_v11 }
 0x201   : > { %v470_v15 = vmax.f32 %v464_v10, 0.0  ;;  %476 = vst [vmem:[%s241_s9 + $0x8] sm:$0xff] %v472_v14 }
 0x202   : > { %475 = vst [vmem:[%s241_s9] sm:$0xff] %v471_v12  ;;  %v469_v16 = vmax.f32 %v459_v13, 0.0 }
 0x203   : > { %v474_v18 = vadd.f32 %v470_v15, %v246_v48 }
 0x204   : > { %v473_v17 = vadd.f32 %v469_v16, %v245_v47 }
 0x205   : > { %478 = vst [vmem:[%s241_s9 + $0x18] sm:$0xff] %v474_v18 }
 0x206   : > { %477 = vst [vmem:[%s241_s9 + $0x10] sm:$0xff] %v473_v17 }
 0x207 PF: > { %s16_s18 = sadd.s32 1, %s801_s18  }
 0x208   : > { %p13_p3 = scmp.ge.s32.totalorder %s16_s18, 4  }
 0x20a   :  { %15 = sbr.rel (!%p13_p3) target bundleno = 1 (0x1), region = 75 }
 0x211   :  { %501 = vsyncpa [#allocation3], 1 }
 0x212   :  { %503 = vsyncpa [#allocation3 + $0x1], 1 }

</bundles_post_ra>
